<compile_context>
chip_gen: v7x
topology: tpu7x:2x2x1
jax: 0.10.0
libtpu: 0.0.40
codegen_flags: <defaults>
</compile_context>

<pallas_src>
import jax
import jax.numpy as jnp
from jax.experimental import pallas as pl
from jax.experimental.pallas import tpu as pltpu


# ----------------------------------------------------------------------------
# Buffer construction (glue, plain JAX) — mirrors construct_transition_matrices
# ----------------------------------------------------------------------------
def construct_transition_matrices(num_timesteps: int, diffusion_speed: float) -> jnp.ndarray:
    """(T+1, 2, 2) tensor of per-timestep flip / not-flip probabilities."""
    t = jnp.arange(num_timesteps + 1, dtype=jnp.float32)
    flip_prob = 0.5 * (1.0 - (1.0 - 2.0 * diffusion_speed) ** t)          # (T+1,)
    not_flip_prob = 1.0 - flip_prob
    Qt = jnp.stack(
        [
            jnp.stack([not_flip_prob, flip_prob], axis=-1),
            jnp.stack([flip_prob, not_flip_prob], axis=-1),
        ],
        axis=-2,
    )                                                                     # (T+1, 2, 2)
    assert Qt.shape == (num_timesteps + 1, 2, 2)
    return Qt


# ----------------------------------------------------------------------------
# Pallas kernel: scalar SMEM path, single packed operand
#   wb = [w, b];  pred = w*1 + b;  loss = mean((pred - 0)^2) = (w + b)^2
# ----------------------------------------------------------------------------
def _dummy_loss_kernel(wb_ref, o_ref):
    # Pure scalar-ALU / SMEM work: no vregs, no XLU reduce, no masked stores.
    pred = wb_ref[0] + wb_ref[1]
    o_ref[0] = pred * pred


_dummy_loss_call = pl.pallas_call(
    _dummy_loss_kernel,
    out_shape=jax.ShapeDtypeStruct((1,), jnp.float32),
    in_specs=[pl.BlockSpec(memory_space=pltpu.MemorySpace.SMEM)],
    out_specs=pl.BlockSpec(memory_space=pltpu.MemorySpace.SMEM),
    # 1 add + 1 mul, 2 f32 read + 1 f32 write: tell XLA this call is negligible.
    cost_estimate=pl.CostEstimate(flops=2, transcendentals=0, bytes_accessed=12),
)


# Differentiable wrapper: d loss / d w = d loss / d b = 2 * (w + b).
@jax.custom_vjp
def _dummy_mse_loss(wb: jnp.ndarray) -> jnp.ndarray:
    return _dummy_loss_call(wb)[0]


def _dummy_mse_loss_fwd(wb):
    return _dummy_loss_call(wb)[0], wb


def _dummy_mse_loss_bwd(wb, g):
    s = 2.0 * (wb[0] + wb[1]) * g
    return (jnp.stack([s, s]),)


_dummy_mse_loss.defvjp(_dummy_mse_loss_fwd, _dummy_mse_loss_bwd)

# jit so the custom call + trailing squeeze become one cached executable.
dummy_mse_loss = jax.jit(_dummy_mse_loss)


# ----------------------------------------------------------------------------
# Module-equivalent wrapper
# ----------------------------------------------------------------------------
class GroundTruthDiffusionPallas:
    def __init__(self, timesteps: int, diffusion_speed: float,
                 threshold_sample: float, ref_graph_edges, ref_graph_feat, key):
        self.num_timesteps = timesteps
        self.diffusion_speed = diffusion_speed
        self.threshold_sample = threshold_sample
        # Buffers (unused in forward, kept for parity with the reference module;
        # deliberately NOT fed into the Pallas kernel).
        self.ref_graph_edges = ref_graph_edges
        self.ref_graph_feat = ref_graph_feat
        self.Qt = construct_transition_matrices(timesteps, diffusion_speed)
        # dummy_par = nn.Linear(1, 1): weight (1,1), bias (1,)
        # PyTorch default init: U(-1/sqrt(fan_in), 1/sqrt(fan_in)), fan_in = 1.
        kw, kb = jax.random.split(key)
        w = jax.random.uniform(kw, (), jnp.float32, -1.0, 1.0)
        b = jax.random.uniform(kb, (), jnp.float32, -1.0, 1.0)
        # Packed (2,) operand -> single SMEM DMA at kernel entry.
        self.wb = jnp.stack([w, b])

    def forward(self, x_start=None, *args, **kwargs):
        # F.mse_loss(self.dummy_par(ones((1,))), zeros((1,)))
        # NOTE: x_start is intentionally ignored, exactly as in the reference.
        # ones/zeros are compile-time constants folded into the kernel math.
        return dummy_mse_loss(self.wb)


if __name__ == "__main__":
    key = jax.random.PRNGKey(0)

    # Small deterministic "reference graph" buffers (unused by forward).
    ref_graph_edges = jnp.array([[0, 1, 2, 3], [1, 2, 3, 0]], dtype=jnp.int32)
    ref_graph_feat = jax.random.normal(jax.random.fold_in(key, 2), (4, 8), jnp.float32)

    module = GroundTruthDiffusionPallas(
        timesteps=8, diffusion_speed=0.3, threshold_sample=0.5,
        ref_graph_edges=ref_graph_edges, ref_graph_feat=ref_graph_feat, key=key,
    )

    # Small synthetic "batch" input (ignored by the forward pass, as in torch).
    x_key = jax.random.fold_in(key, 1)
    x_start = jax.random.normal(x_key, (2, 4, 16, 16), jnp.float32)

    loss = module.forward(x_start)
    loss = jax.block_until_ready(loss)

    # Cross-check against the closed form (w*1 + b - 0)^2.
    expected = (module.wb[0] + module.wb[1]) ** 2
    assert jnp.allclose(loss, expected, atol=1e-6), (loss, expected)

    # Gradient sanity check via the custom VJP: d/dw = d/db = 2*(w+b).
    grad_wb = jax.grad(_dummy_mse_loss)(module.wb)
    expected_g = 2.0 * (module.wb[0] + module.wb[1])
    assert jnp.allclose(grad_wb, jnp.stack([expected_g, expected_g]), atol=1e-6)

    print("KERNEL_OK")
</pallas_src>

<mosaic_0001>
module attributes {stable_mosaic.version = 11 : i64} {
  func.func @_dummy_loss_kernel(%arg0: memref<2xf32, #tpu.memory_space<smem>>, %arg1: memref<1xf32, #tpu.memory_space<smem>>) attributes {dimension_semantics = [], scalar_prefetch = 0 : i64, scratch_operands = 0 : i64, tpu.core_type = #tpu.core_type<tc>} {
    %c0 = arith.constant 0 : index
    %0 = memref.load %arg0[%c0] : memref<2xf32, #tpu.memory_space<smem>>
    %c1 = arith.constant 1 : index
    %1 = memref.load %arg0[%c1] : memref<2xf32, #tpu.memory_space<smem>>
    %2 = arith.addf %0, %1 : f32
    %3 = arith.mulf %2, %2 : f32
    %c0_0 = arith.constant 0 : index
    %4 = memref.load %arg1[%c0_0] : memref<1xf32, #tpu.memory_space<smem>>
    memref.store %3, %arg1[%c0_0] : memref<1xf32, #tpu.memory_space<smem>>
    return
  }
}

</mosaic_0001>

<bundles_post_ra>
// kernel: _dummy_mse_loss.1
= control target key start
LH: loop header
LB: loop body
LE: loop exit
PB: predicated region body
PF: predicated region fallthrough
CT: control target
= control target key end

     0   :  { %6 = vsyncpa [#allocation3], 0  ;;  %s103_s0 = inlined_call_operand.hbm [shape: f32[2], index: 0, kind: input, shape index: {}]   ;;  %s104_s1 = inlined_call_operand.hbm [shape: f32[1], index: 1, kind: output, shape index: {}]  }
   0x1   :  { %7 = vsyncpa [#allocation4], 0  ;;  %s43_s8 = scalar_lea.hbm %s103_s0, 16 }
   0x2   :  { %p44_p0 = scmp.ne.s32.totalorder %s103_s0, %s43_s8  ;;  %p47_p1 = scmp.lt.u32.totalorder %s43_s8, %s103_s0 }
   0x4   :  { %p49_p2 = pnand %p47_p1, %p44_p0 }
   0x6   :  { %52 = shalt.err (!%p49_p2)
}
   0x7   :  { %s67_s13 = smov [#allocation2]  }
   0x8   :  { %15 = dma.hbm_to_smem %s103_s0, 16, %s67_s13, [#allocation3]  }
   0x9   :  { %63 = dma.done.wait [#allocation3], 16  }
   0xa   :  { %64 = vsyncadd [#allocation3], 4294967280 }
   0xb   :  { %19 = sfence }
   0xc   :  { %s20_s16 = sld [smem:[#allocation2]]  ;;  %s40_s17 = sld [smem:[#allocation2 + $0x1]] }
   0xd   :  { %s53_s22 = scalar_lea.hbm %s104_s1, 16 }
   0xe   :  { %p54_p3 = scmp.ne.s32.totalorder %s104_s1, %s53_s22  ;;  %p57_p4 = scmp.lt.u32.totalorder %s53_s22, %s104_s1 }
  0x10   :  { %p59_p5 = pnand %p57_p4, %p54_p3 }
  0x12   :  { %s22_s18 = sadd.f32 %s40_s17, %s20_s16 }
  0x14   :  { %s23_s19 = smul.f32 %s22_s18, %s22_s18 }
  0x16   :  { %25 = sst [smem:[#allocation5]] %s23_s19 }
  0x17   :  { %62 = shalt.err (!%p59_p5)
}
  0x18   :  { %s68_s0 = smov [#allocation5]  }
  0x19   :  { %33 = dma.smem_to_hbm %s68_s0, 16, %s104_s1, [#allocation4]  }
  0x1a   :  { %65 = dma.done.wait [#allocation4], 16  }
  0x1b   :  { %66 = vsyncadd [#allocation4], 4294967280 }
  0x1c   :  { %37 = sfence }
  0x1d   :  { %38 = vsyncpa [#allocation3], 1 }
  0x1e   :  { %39 = vsyncpa [#allocation4], 1 }

</bundles_post_ra>
